<compile_context>
chip_gen: v5e
topology: v5e:2x2
jax: 0.10.0
libtpu: 0.0.40
codegen_flags: <defaults>
</compile_context>

<pallas_src>
from functools import partial

import jax
import jax.numpy as jnp
from jax.experimental import pallas as pl
from jax.experimental.pallas import tpu as pltpu


def embeddings_kernel(patches_ref, w_ref, pos_ref, out_ref):
    # patches_ref: (1, TS, K) bf16   w_ref: (K, O) bf16
    # pos_ref:     (TS, O)   f32     out_ref: (1, TS, O) f32
    proj = jnp.dot(patches_ref[0], w_ref[...],
                   preferred_element_type=jnp.float32)        # MXU, f32 accumulate
    out_ref[0] = (proj + pos_ref[...]).astype(out_ref.dtype)  # single VPU add


def prepare_params(conv_w, conv_b, cls_token, pos_emb):
    """One-time parameter prep: (K, O) bf16 weight; bias + cls folded into pos table."""
    O, C, P, _ = conv_w.shape
    K = C * P * P
    S = pos_emb.shape[1]                                      # num_patches + 1
    w_kxo = conv_w.reshape(O, K).T.astype(jnp.bfloat16)       # (K, O)
    pos_fused = pos_emb.reshape(S, O).astype(jnp.float32)
    pos_fused = pos_fused.at[1:].add(conv_b.astype(jnp.float32))                # fold conv bias
    pos_fused = pos_fused.at[0].add(cls_token.reshape(O).astype(jnp.float32))   # fold cls row
    return w_kxo, pos_fused


@partial(jax.jit, static_argnames=("patch_size", "seq_tile"))
def embeddings_forward(x, w_kxo, pos_fused, patch_size, seq_tile=256):
    """x: NCHW float image batch. Returns [B, N+1, hidden] in float32."""
    B, C, H, W = x.shape
    P = patch_size
    Hp, Wp = H // P, W // P
    N = Hp * Wp
    K = C * P * P
    S = N + 1
    O = w_kxo.shape[1]

    # --- glue: extract non-overlapping patches (bf16), flatten to [B, N, K] ---
    patches = x.astype(jnp.bfloat16).reshape(B, C, Hp, P, Wp, P)
    patches = patches.transpose(0, 2, 4, 1, 3, 5).reshape(B, N, K)
    # Dummy zero row at sequence position 0 (the cls slot): zero @ W == 0, so the
    # kernel produces the cls row purely from pos_fused[0] — no concat needed.
    patches = jnp.pad(patches, ((0, 0), (1, 0), (0, 0)))      # (B, S, K) bf16

    # Sequence tile: full extent if it fits, else a sublane-aligned (x8) tile.
    ts = min(seq_tile, S)
    if ts < S:
        ts = max(8, (ts // 8) * 8)
    grid = (B, pl.cdiv(S, ts))

    out = pl.pallas_call(
        embeddings_kernel,
        out_shape=jax.ShapeDtypeStruct((B, S, O), jnp.float32),
        grid_spec=pltpu.PrefetchScalarGridSpec(
            num_scalar_prefetch=0,
            grid=grid,
            in_specs=[
                pl.BlockSpec((1, ts, K), lambda b, s: (b, s, 0)),   # patch tile
                pl.BlockSpec((K, O), lambda b, s: (0, 0)),          # weight (grid-invariant)
                pl.BlockSpec((ts, O), lambda b, s: (s, 0)),         # fused pos tile
            ],
            out_specs=pl.BlockSpec((1, ts, O), lambda b, s: (b, s, 0)),
        ),
        compiler_params=pltpu.CompilerParams(
            dimension_semantics=("parallel", "parallel"),
            vmem_limit_bytes=32 * 1024 * 1024,
        ),
    )(patches, w_kxo, pos_fused)
    return out


def reference_forward(x, conv_w, conv_b, cls_token, pos_emb, patch_size):
    """Pure-JAX f32 reference matching the PyTorch module semantics."""
    B, C, H, W = x.shape
    P = patch_size
    Hp, Wp = H // P, W // P
    N = Hp * Wp
    O = conv_w.shape[0]
    K = C * P * P
    patches = x.reshape(B, C, Hp, P, Wp, P).transpose(0, 2, 4, 1, 3, 5).reshape(B, N, K)
    proj = patches @ conv_w.reshape(O, K).T + conv_b           # (B, N, O)
    cls = jnp.broadcast_to(cls_token.reshape(1, 1, O), (B, 1, O))
    seq = jnp.concatenate([cls, proj], axis=1)                 # (B, N+1, O)
    return seq + pos_emb.reshape(1, N + 1, O)
    # nn.Dropout(p=0.0) is an identity in the forward pass; nothing to add.


if __name__ == "__main__":
    # Small shapes consistent with the module: image 32x32, patch 8 -> 16 patches,
    # 3 channels, hidden 128 (lane-dense output), batch 2.
    batch = 2
    num_channels = 3
    image_size = 32
    patch_size = 8
    hidden_size = 128
    num_patches = (image_size // patch_size) ** 2              # 16 -> seq = 17

    key = jax.random.PRNGKey(0)
    kx, kw, kb, kc, kp = jax.random.split(key, 5)

    x = jax.random.normal(kx, (batch, num_channels, image_size, image_size),
                          dtype=jnp.float32)
    conv_w = 0.02 * jax.random.normal(
        kw, (hidden_size, num_channels, patch_size, patch_size), dtype=jnp.float32)
    conv_b = 0.02 * jax.random.normal(kb, (hidden_size,), dtype=jnp.float32)
    cls_token = jax.random.normal(kc, (1, 1, hidden_size), dtype=jnp.float32)
    pos_emb = jax.random.normal(kp, (1, num_patches + 1, hidden_size),
                                dtype=jnp.float32)

    w_kxo, pos_fused = prepare_params(conv_w, conv_b, cls_token, pos_emb)
    ref = reference_forward(x, conv_w, conv_b, cls_token, pos_emb, patch_size)

    # Tiled path (multiple sequence tiles, ragged last tile).
    out_tiled = embeddings_forward(x, w_kxo, pos_fused,
                                   patch_size=patch_size, seq_tile=8)
    out_tiled = jax.block_until_ready(out_tiled)
    assert out_tiled.shape == (batch, num_patches + 1, hidden_size), out_tiled.shape
    err_t = float(jnp.max(jnp.abs(out_tiled - ref)))
    assert err_t < 2e-2, err_t                                  # bf16-operand matmul tolerance

    # Full-extent path (single sequence block).
    out_full = embeddings_forward(x, w_kxo, pos_fused,
                                  patch_size=patch_size, seq_tile=256)
    out_full = jax.block_until_ready(out_full)
    err_f = float(jnp.max(jnp.abs(out_full - ref)))
    assert err_f < 2e-2, err_f

    print("KERNEL_OK")
</pallas_src>

<mosaic_0001>
module attributes {stable_mosaic.version = 11 : i64} {
  func.func @embeddings_kernel(%arg0: i32, %arg1: i32, %arg2: memref<1x8x192xbf16, #tpu.memory_space<vmem>>, %arg3: memref<192x128xbf16, #tpu.memory_space<vmem>>, %arg4: memref<8x128xf32, #tpu.memory_space<vmem>>, %arg5: memref<1x8x128xf32, #tpu.memory_space<vmem>>) attributes {dimension_semantics = [#tpu.dimension_semantics<parallel>, #tpu.dimension_semantics<parallel>], iteration_bounds = array<i64: 2, 3>, scalar_prefetch = 0 : i64, scratch_operands = 0 : i64, tpu.core_type = #tpu.core_type<tc>, window_params = [{transform_indices = @transform_0, window_bounds = array<i64: 1, 8, 192>}, {pipeline_mode = #tpu.pipeline_mode<synchronous>, transform_indices = @transform_1, window_bounds = array<i64: 192, 128>}, {transform_indices = @transform_2, window_bounds = array<i64: 8, 128>}, {transform_indices = @transform_3, window_bounds = array<i64: 1, 8, 128>}]} {
    %c0 = arith.constant 0 : index
    %c0_0 = arith.constant 0 : index
    %c0_1 = arith.constant 0 : index
    %0 = vector.load %arg2[%c0, %c0_0, %c0_1] : memref<1x8x192xbf16, #tpu.memory_space<vmem>>, vector<1x8x192xbf16>
    %1 = vector.shape_cast %0 : vector<1x8x192xbf16> to vector<8x192xbf16>
    %c0_2 = arith.constant 0 : index
    %c0_3 = arith.constant 0 : index
    %2 = vector.load %arg3[%c0_2, %c0_3] : memref<192x128xbf16, #tpu.memory_space<vmem>>, vector<192x128xbf16>
    %cst = arith.constant dense<0.000000e+00> : vector<8x128xf32>
    %3 = tpu.matmul %1, %2, %cst {dimension_numbers = #tpu.dot_dimension_numbers<[1], [0], [0], [1], [0, 0, 1, 1], [], []>} : vector<8x192xbf16>, vector<192x128xbf16>, vector<8x128xf32> -> vector<8x128xf32>
    %c0_4 = arith.constant 0 : index
    %c0_5 = arith.constant 0 : index
    %4 = vector.load %arg4[%c0_4, %c0_5] : memref<8x128xf32, #tpu.memory_space<vmem>>, vector<8x128xf32>
    %5 = arith.addf %3, %4 : vector<8x128xf32>
    %c0_6 = arith.constant 0 : index
    %c0_7 = arith.constant 0 : index
    %c0_8 = arith.constant 0 : index
    %6 = vector.load %arg5[%c0_6, %c0_7, %c0_8] : memref<1x8x128xf32, #tpu.memory_space<vmem>>, vector<1x8x128xf32>
    %7 = vector.shape_cast %6 : vector<1x8x128xf32> to vector<8x128xf32>
    %8 = vector.shape_cast %5 : vector<8x128xf32> to vector<1x8x128xf32>
    tpu.vector_store %arg5[%c0_6, %c0_7, %c0_8], %8 {strides = array<i32>} : memref<1x8x128xf32, #tpu.memory_space<vmem>>, vector<1x8x128xf32>,
    return
  }
  func.func @transform_0(%arg0: i32, %arg1: i32) -> (i32, i32, i32) {
    %c0_i32 = arith.constant 0 : i32
    %c0_i32_0 = arith.constant 0 : i32
    return %arg0, %arg1, %c0_i32 : i32, i32, i32
  }
  func.func @transform_1(%arg0: i32, %arg1: i32) -> (i32, i32) {
    %c0_i32 = arith.constant 0 : i32
    %c0_i32_0 = arith.constant 0 : i32
    %c0_i32_1 = arith.constant 0 : i32
    return %c0_i32, %c0_i32_0 : i32, i32
  }
  func.func @transform_2(%arg0: i32, %arg1: i32) -> (i32, i32) {
    %c0_i32 = arith.constant 0 : i32
    %c0_i32_0 = arith.constant 0 : i32
    return %arg1, %c0_i32 : i32, i32
  }
  func.func @transform_3(%arg0: i32, %arg1: i32) -> (i32, i32, i32) {
    %c0_i32 = arith.constant 0 : i32
    %c0_i32_0 = arith.constant 0 : i32
    return %arg0, %arg1, %c0_i32 : i32, i32, i32
  }
}

</mosaic_0001>

<bundles_post_ra>
// kernel: embeddings_forward.1
= control target key start
LH: loop header
LB: loop body
LE: loop exit
PB: predicated region body
PF: predicated region fallthrough
CT: control target
= control target key end

     0   :  { %s633_s12 = smov 0   ;;  %s635_s13 = smov 0   ;;  %s728_s0 = inlined_call_operand.vmem [shape: bf16[2,17,192], index: 0, kind: input, shape index: {}]   ;;  %s729_s1 = inlined_call_operand.vmem [shape: bf16[192,128], index: 1, kind: input, shape index: {}]   ;;  %s730_s2 = inlined_call_operand.vmem [shape: f32[17,128], index: 2, kind: input, shape index: {}]   ;;  %s731_s3 = inlined_call_operand.vmem [shape: f32[2,17,128], index: 3, kind: output, shape index: {}]  }
   0x1   :  { %s637_s14 = smov 0   ;;  %s639_s15 = smov 0  }
   0x2   :  { %s641_s16 = smov 0  }
   0x3 LB: > { %s22_s17 = sadd.s32 1, %s603_s14  ;;  %s25_s18 = sadd.s32 1, %s607_s15  ;;  %s611_s16 = sphi %s641_s16, %s13_s16   ;;  %s607_s15 = sphi %s639_s15, %s735_s15   ;;  %s603_s14 = sphi %s637_s14, %s734_s14   ;;  %s599_s13 = sphi %s635_s13, %s733_s13   ;;  %s595_s12 = sphi %s633_s12, %s732_s12  }
   0x4   : > { %p23_p0 = scmp.ge.s32.totalorder %s22_s17, 3  ;;  %p463_p1 = scmp.ge.s32.totalorder %s611_s16, 1 }
   0x5   : > { %p166_p2 = scmp.lt.s32.totalorder %s611_s16, 7 }
   0x6   : > { %s737_s17 = smov (%p23_p0, %s22_s17), 0  ;;  %s739_s18 = smov (!%p23_p0, %s25_s18), %s607_s15 }
   0x7   : > { %p167_p3 = pnand %p463_p1, %p166_p2  ;;  %p27_p4 = scmp.ge.s32.totalorder %s739_s18, 2 }
   0x8   : > { %p201_p5 = scmp.lt.s32.totalorder (!%p167_p3), %s599_s13, 1  ;;  %p203_p6 = scmp.lt.s32.totalorder (!%p167_p3), %s595_s12, 2 }
   0x9   : > { %s741_s18 = smov (%p27_p4, %s739_s18), 0  ;;  %170 = sbr.rel (%p167_p3) target bundleno = 180 (0xb4), region = 32 }
   0xe   : > { %v526_v0 = vld [vmem:[%s729_s1 + $0x38] sm:$0xff]  ;;  %v525_v2 = vld [vmem:[%s729_s1 + $0x30] sm:$0xff]  ;;  %s743_s13 = smov (!%p201_p5, %s599_s13), 1  ;;  %s745_s12 = smov (!%p203_p6, %s595_s12), 2  ;;  %v524_v4 = vld [vmem:[%s729_s1 + $0x28] sm:$0xff]  ;;  %vm327_vm0 = vcmask 523264  }
   0xf   : > { %v530_v1 = vld [vmem:[%s729_s1 + $0x58] sm:$0xff]  ;;  %331 = vmatpush.bf16.msra.mxu0 %v526_v0  ;;  %v529_v3 = vld [vmem:[%s729_s1 + $0x50] sm:$0xff]  ;;  %s531_s27 = smul.u32 6, %s743_s13  ;;  %s464_s28 = sshll.u32 %s745_s12, 1  ;;  %v528_v5 = vld [vmem:[%s729_s1 + $0x48] sm:$0xff] }
  0x10   : > { %348 = vmatpush.bf16.msra.mxu1 %v530_v1  ;;  %v523_v7 = vld [vmem:[%s729_s1 + $0x20] sm:$0xff]  ;;  %v522_v10 = vld [vmem:[%s729_s1 + $0x18] sm:$0xff]  ;;  %s532_s24 = smul.u32 3, %s743_s13  ;;  %v521_v12 = vld [vmem:[%s729_s1 + $0x10] sm:$0xff]  ;;  %s466_s13 = sshll.u32 %s745_s12, 3 }
  0x11   : > { %s207_s4 = sadd.s32 %s531_s27, %s464_s28  ;;  %v527_v9 = vld [vmem:[%s729_s1 + $0x40] sm:$0xff]  ;;  %v520_v13 = vld [vmem:[%s729_s1 + $0x8] sm:$0xff] }
  0x12   : > { %s465_s7 = sshll.u32 %s207_s4, 2  ;;  %s219_s25 = sadd.s32 %s532_s24, %s745_s12  ;;  %v519_v15 = vld [vmem:[%s729_s1] sm:$0xff] }
  0x13   : > { %332 = vmatpush.bf16.msra.mxu0 %v525_v2  ;;  %s209_s10 = scalar_lea.vmem %s728_s0, %s465_s7  ;;  %s213_s7 = scalar_lea.vmem %s730_s2, %s466_s13 }
  0x14   : > { %349 = vmatpush.bf16.msra.mxu1 %v529_v3  ;;  %v223_v6 = vld [vmem:[%s209_s10] sm:$0xff]  ;;  %s467_s8 = sshll.u32 %s219_s25, 3 }
  0x15   : > { %v251_v8 = vunpack.c.h.b16 %v223_v6  ;;  %v250_v14 = vunpack.c.l.b16 %v223_v6  ;;  %v248_v19 = vld [vmem:[%s213_s7] sm:$0xff]  ;;  %s221_s11 = scalar_lea.vmem %s731_s3, %s467_s8 }
  0x17   : > { %333 = vmatpush.bf16.msra.mxu0 %v524_v4  ;;  %v253_v11 = vpack.c.b16 %v251_v8, %v251_v8  ;;  %v252_v16 = vpack.c.b16 %v250_v14, %v250_v14 }
  0x18   : > { %350 = vmatpush.bf16.msra.mxu1 %v528_v5 }
  0x1b   : > { %334 = vmatpush.bf16.msra.mxu0 %v523_v7 }
  0x1c   : > { %351 = vmatpush.bf16.msra.mxu1 %v527_v9 }
  0x1f   : > { %335 = vmatpush.bf16.msra.mxu0 %v522_v10  ;;  %516 = vmatmul.msk.bf16.vlgmr.msra.gmra.mxu1 %vm327_vm0, %v253_v11 }
  0x23   : > { %336 = vmatpush.bf16.msra.mxu0 %v521_v12 }
  0x27   : > { %337 = vmatpush.bf16.msra.mxu0 %v520_v13 }
  0x2b   : > { %338 = vmatpush.bf16.msra.mxu0 %v519_v15 }
  0x2e   : > { %339 = vmatmul.bf16.vlgmr.msra.gmra.mxu0 %v252_v16 }
  0x9c   : > { %v353_v17 = vpop.f32.mrf.mxu1 }
  0xa4   : > { %v355_v18 = vpop.f32.mrf.mxu1 }
  0xab   : > { %v340_v20 = vpop.f32.mrf.mxu0 }
  0xac   : > { %v341_v21 = vadd.f32 %v340_v20, %v248_v19 }
  0xae   : > { %v354_v22 = vadd.f32 %v353_v17, %v341_v21 }
  0xb0   : > { %357 = vst [vmem:[%s221_s11] sm:$0xff] %v354_v22 }
  0xb3   : > { %v342_v23 = vpop.f32.mrf.mxu0 }
  0xb4 PF: > { %s13_s16 = sadd.s32 1, %s611_s16   ;;  %s732_s12 = smov %s603_s14 }
  0xb5   : > { %p10_p7 = scmp.ge.s32.totalorder %s13_s16, 8   ;;  %s733_s13 = smov %s607_s15 }
  0xb6   : > { %s734_s14 = smov %s737_s17  ;;  %s735_s15 = smov %s741_s18 }
  0xb7   :  { %12 = sbr.rel (!%p10_p7) target bundleno = 3 (0x3), region = 65 }

</bundles_post_ra>
